<compile_context>
chip_gen: v6e
topology: v6e:2x2x1
jax: 0.10.0
libtpu: 0.0.40
codegen_flags: <defaults>
</compile_context>

<pallas_src>
import functools
import math

import jax
import jax.numpy as jnp
from jax.experimental import pallas as pl
from jax.experimental.pallas import tpu as pltpu


# ----------------------------------------------------------------------------
# Fused attention kernel (one grid step = Bt batch rows, all heads)
# ----------------------------------------------------------------------------
def _fused_attention_kernel(x_ref, mask_ref, wqkv_ref, bqkv_ref, wff_ref, bff_ref,
                            o_ref, *, num_head, head_dim, block_batch, seq_len):
    # block views:
    #   x_ref    : (Bt, S, D)  f32
    #   mask_ref : (Bt, 1, S)  f32
    #   wqkv_ref : (D, 3*H*hd) bf16     bqkv_ref : (1, 3*H*hd) f32
    #   wff_ref  : (H*hd, D)   bf16     bff_ref  : (1, D)      f32
    #   o_ref    : (Bt, S, D)  f32
    Bt, S = block_batch, seq_len
    hd = head_dim
    HD = num_head * head_dim
    D = o_ref.shape[-1]
    M = Bt * S

    # fused QKV projection: one bf16 MXU matmul, f32 accumulation.
    # (1/sqrt(head_dim) is already folded into the W_q / b_q columns.)
    x2 = x_ref[...].reshape(M, D).astype(jnp.bfloat16)          # collapse rows: fill MXU
    qkv = jnp.dot(x2, wqkv_ref[...],
                  preferred_element_type=jnp.float32) + bqkv_ref[...]   # (M, 3HD) f32
    qkv = qkv.reshape(Bt, S, 3 * HD)

    # additive mask bias, broadcast ONCE per grid step and reused by every head
    bias = jnp.broadcast_to(-1.0e6 * (1.0 - mask_ref[...]), (Bt, S, S))  # f32

    acc = jnp.zeros((M, D), jnp.float32)                        # output-projection accum
    for h in range(num_head):                                   # static unroll, H is small
        # heads are contiguous column slices of the QKV slab (no split/combine transposes)
        q = qkv[:, :, h * hd:(h + 1) * hd].astype(jnp.bfloat16)
        k = qkv[:, :, HD + h * hd: HD + (h + 1) * hd].astype(jnp.bfloat16)
        v = qkv[:, :, 2 * HD + h * hd: 2 * HD + (h + 1) * hd].astype(jnp.bfloat16)

        # batched scores, contracting the last dims directly (no k transpose relayout)
        scores = jnp.einsum('bqd,bkd->bqk', q, k,
                            preferred_element_type=jnp.float32)  # (Bt, S, S) f32
        scores = scores + bias

        # numerically stable softmax over keys -- kept in f32 (v5e VPU/EUP have no bf16)
        scores = scores - jnp.max(scores, axis=-1, keepdims=True)
        e = jnp.exp(scores)
        denom = jnp.sum(e, axis=-1, keepdims=True)
        attn = e * pl.reciprocal(denom, approx=True)             # EUP slot, off the VPU path
        # attention dropout is identity in eval mode (p = 0)

        ctx = jnp.einsum('bqk,bkd->bqd', attn.astype(jnp.bfloat16), v,
                         preferred_element_type=jnp.float32)     # (Bt, S, hd)

        # per-head output projection + accumulate (replaces the head concat)
        acc = acc + jnp.dot(ctx.reshape(M, hd).astype(jnp.bfloat16),
                            wff_ref[h * hd:(h + 1) * hd, :],
                            preferred_element_type=jnp.float32)  # (M, D)

    out = acc + bff_ref[...]
    o_ref[...] = out.reshape(Bt, S, D).astype(o_ref.dtype)


# ----------------------------------------------------------------------------
# One-time parameter preparation (concat, scale fold, bf16 cast) -- NOT per call
# ----------------------------------------------------------------------------
def prepare_params(params, *, num_head, head_dim, mxu_dtype=jnp.bfloat16):
    D = params["wq"].shape[0]
    HD = num_head * head_dim
    scale = 1.0 / math.sqrt(head_dim)
    wq = params["wq"] * scale                    # fold 1/sqrt(hd) into the Q projection
    bq = params["bq"] * scale
    wqkv = jnp.concatenate([wq, params["wk"], params["wv"]], axis=1).astype(mxu_dtype)
    bqkv = jnp.concatenate([bq, params["bk"], params["bv"]]).reshape(1, 3 * HD)
    return dict(
        wqkv=wqkv,                               # (D, 3*HD) bf16
        bqkv=bqkv.astype(jnp.float32),           # (1, 3*HD) f32 (added to f32 accum)
        wff=params["wff"].astype(mxu_dtype),     # (HD, D)   bf16
        bff=params["bff"].reshape(1, D).astype(jnp.float32),   # (1, D) f32
    )


def _choose_block_batch(B, S, target_rows=128):
    """Pack batch rows so the projection matmuls see ~target_rows MXU rows,
    while keeping >= 2 grid steps when B allows (v7x megacore)."""
    bt = max(1, min(B, target_rows // max(S, 1)))
    while B % bt:
        bt -= 1
    if B // bt < 2 and B >= 2:
        bt = max(1, B // 2)
        while B % bt:
            bt -= 1
    return bt


def attention_forward(prepared, X, mask, *, num_head, head_dim, block_batch=None):
    """X: (B, S, D) f32, mask: (B, S) -> (B, S, D) f32."""
    B, S, D = X.shape
    HD = num_head * head_dim
    Bt = _choose_block_batch(B, S) if block_batch is None else block_batch
    assert B % Bt == 0

    mask3 = mask.reshape(B, 1, S).astype(jnp.float32)

    kernel = functools.partial(_fused_attention_kernel, num_head=num_head,
                               head_dim=head_dim, block_batch=Bt, seq_len=S)

    return pl.pallas_call(
        kernel,
        out_shape=jax.ShapeDtypeStruct((B, S, D), jnp.float32),
        grid=(B // Bt,),
        in_specs=[
            pl.BlockSpec((Bt, S, D), lambda b: (b, 0, 0)),       # X (Bt packed batch rows)
            pl.BlockSpec((Bt, 1, S), lambda b: (b, 0, 0)),       # mask
            pl.BlockSpec((D, 3 * HD), lambda b: (0, 0)),         # fused W_qkv (fetched once)
            pl.BlockSpec((1, 3 * HD), lambda b: (0, 0)),         # fused b_qkv
            pl.BlockSpec((HD, D), lambda b: (0, 0)),             # W_ff
            pl.BlockSpec((1, D), lambda b: (0, 0)),              # b_ff
        ],
        out_specs=pl.BlockSpec((Bt, S, D), lambda b: (b, 0, 0)),
        compiler_params=pltpu.CompilerParams(
            dimension_semantics=("parallel",)),                  # v7x: batch grid over 2 TCs
    )(X, mask3, prepared["wqkv"], prepared["bqkv"], prepared["wff"], prepared["bff"])


# ----------------------------------------------------------------------------
# Reference (pure JAX, f32) for sanity check
# ----------------------------------------------------------------------------
def split_heads(x, num_head, head_dim):
    B, S, _ = x.shape
    return x.reshape(B, S, num_head, head_dim).transpose(0, 2, 1, 3)


def combine_heads(x):
    B, H, S, hd = x.shape
    return x.transpose(0, 2, 1, 3).reshape(B, S, H * hd)


def reference_forward(params, X, mask, *, num_head, head_dim):
    q = X @ params["wq"] + params["bq"]
    k = X @ params["wk"] + params["bk"]
    v = X @ params["wv"] + params["bv"]
    Q = split_heads(q, num_head, head_dim)
    K = split_heads(k, num_head, head_dim)
    V = split_heads(v, num_head, head_dim)
    dot = jnp.einsum("bhqd,bhkd->bhqk", Q, K) / math.sqrt(head_dim)
    dot = dot - 1.0e6 * (1.0 - mask[:, None, None, :])
    attn = jax.nn.softmax(dot, axis=-1)
    out = jnp.einsum("bhqk,bhkd->bhqd", attn, V)
    out = combine_heads(out)
    return out @ params["wff"] + params["bff"]


if __name__ == "__main__":
    # config: transformer_dim=32, num_head=2, head_dim=16, attn_type='softmax',
    #         attention_dropout=0.0, attention_grad_checkpointing=False
    B, S, D = 4, 8, 32
    num_head, head_dim = 2, 16

    key = jax.random.PRNGKey(0)
    keys = jax.random.split(key, 10)

    def init_linear(kw, kb, din, dout):
        bound = 1.0 / math.sqrt(din)
        w = jax.random.uniform(kw, (din, dout), jnp.float32, -bound, bound)
        b = jax.random.uniform(kb, (dout,), jnp.float32, -bound, bound)
        return w, b

    wq, bq = init_linear(keys[0], keys[1], D, num_head * head_dim)
    wk, bk = init_linear(keys[2], keys[3], D, num_head * head_dim)
    wv, bv = init_linear(keys[4], keys[5], D, num_head * head_dim)
    wff, bff = init_linear(keys[6], keys[7], num_head * head_dim, D)
    params = dict(wq=wq, bq=bq, wk=wk, bk=bk, wv=wv, bv=bv, wff=wff, bff=bff)

    X = jax.random.normal(keys[8], (B, S, D), jnp.float32)
    # mask: first batches fully attended, last batch has 2 padded positions
    mask = jnp.ones((B, S), jnp.float32)
    mask = mask.at[-1, -2:].set(0.0)

    prepared = prepare_params(params, num_head=num_head, head_dim=head_dim)  # one-time
    out = attention_forward(prepared, X, mask, num_head=num_head, head_dim=head_dim)
    out = jax.block_until_ready(out)

    ref = reference_forward(params, X, mask, num_head=num_head, head_dim=head_dim)
    assert out.shape == (B, S, D)
    # tolerance reflects bf16 MXU operands (f32 accumulation) + approx (EUP) reciprocal
    assert jnp.allclose(out, ref, atol=3e-2, rtol=3e-2), "mismatch vs reference"

    print("KERNEL_OK")
</pallas_src>

<mosaic_0001>
module attributes {stable_mosaic.version = 11 : i64} {
  func.func @_fused_attention_kernel(%arg0: i32, %arg1: memref<2x8x32xf32, #tpu.memory_space<vmem>>, %arg2: memref<2x1x8xf32, #tpu.memory_space<vmem>>, %arg3: memref<32x96xbf16, #tpu.memory_space<vmem>>, %arg4: memref<1x96xf32, #tpu.memory_space<vmem>>, %arg5: memref<32x32xbf16, #tpu.memory_space<vmem>>, %arg6: memref<1x32xf32, #tpu.memory_space<vmem>>, %arg7: memref<2x8x32xf32, #tpu.memory_space<vmem>>) attributes {dimension_semantics = [#tpu.dimension_semantics<parallel>], iteration_bounds = array<i64: 2>, scalar_prefetch = 0 : i64, scratch_operands = 0 : i64, tpu.core_type = #tpu.core_type<tc>, window_params = [{transform_indices = @transform_0, window_bounds = array<i64: 2, 8, 32>}, {transform_indices = @transform_1, window_bounds = array<i64: 2, 1, 8>}, {pipeline_mode = #tpu.pipeline_mode<synchronous>, transform_indices = @transform_2, window_bounds = array<i64: 32, 96>}, {pipeline_mode = #tpu.pipeline_mode<synchronous>, transform_indices = @transform_3, window_bounds = array<i64: 1, 96>}, {pipeline_mode = #tpu.pipeline_mode<synchronous>, transform_indices = @transform_4, window_bounds = array<i64: 32, 32>}, {pipeline_mode = #tpu.pipeline_mode<synchronous>, transform_indices = @transform_5, window_bounds = array<i64: 1, 32>}, {transform_indices = @transform_6, window_bounds = array<i64: 2, 8, 32>}]} {
    %c0 = arith.constant 0 : index
    %c0_0 = arith.constant 0 : index
    %c0_1 = arith.constant 0 : index
    %0 = vector.load %arg1[%c0, %c0_0, %c0_1] : memref<2x8x32xf32, #tpu.memory_space<vmem>>, vector<2x8x32xf32>
    %1 = vector.shape_cast %0 : vector<2x8x32xf32> to vector<16x32xf32>
    %2 = arith.truncf %1 : vector<16x32xf32> to vector<16x32xbf16>
    %c0_2 = arith.constant 0 : index
    %c0_3 = arith.constant 0 : index
    %3 = vector.load %arg3[%c0_2, %c0_3] : memref<32x96xbf16, #tpu.memory_space<vmem>>, vector<32x96xbf16>
    %cst = arith.constant dense<0.000000e+00> : vector<16x96xf32>
    %4 = tpu.matmul %2, %3, %cst {dimension_numbers = #tpu.dot_dimension_numbers<[1], [0], [0], [1], [0, 0, 1, 1], [], []>} : vector<16x32xbf16>, vector<32x96xbf16>, vector<16x96xf32> -> vector<16x96xf32>
    %c0_4 = arith.constant 0 : index
    %c0_5 = arith.constant 0 : index
    %5 = vector.load %arg4[%c0_4, %c0_5] : memref<1x96xf32, #tpu.memory_space<vmem>>, vector<1x96xf32>
    %6 = vector.broadcast %5 : vector<1x96xf32> to vector<16x96xf32>
    %7 = arith.addf %4, %6 : vector<16x96xf32>
    %8 = vector.shape_cast %7 : vector<16x96xf32> to vector<2x8x96xf32>
    %c0_6 = arith.constant 0 : index
    %c0_7 = arith.constant 0 : index
    %c0_8 = arith.constant 0 : index
    %9 = vector.load %arg2[%c0_6, %c0_7, %c0_8] : memref<2x1x8xf32, #tpu.memory_space<vmem>>, vector<2x1x8xf32>
    %cst_9 = arith.constant 1.000000e+00 : f32
    %10 = vector.broadcast %cst_9 : f32 to vector<2x1x8xf32>
    %11 = arith.subf %10, %9 : vector<2x1x8xf32>
    %cst_10 = arith.constant -1.000000e+06 : f32
    %12 = vector.broadcast %cst_10 : f32 to vector<2x1x8xf32>
    %13 = arith.mulf %12, %11 : vector<2x1x8xf32>
    %14 = vector.shape_cast %13 : vector<2x1x8xf32> to vector<2x1x8xf32>
    %15 = vector.broadcast %14 : vector<2x1x8xf32> to vector<2x8x8xf32>
    %cst_11 = arith.constant 0.000000e+00 : f32
    %16 = vector.broadcast %cst_11 : f32 to vector<16x32xf32>
    %17 = vector.extract_strided_slice %8 {offsets = [0, 0, 0], sizes = [2, 8, 16], strides = [1, 1, 1]} : vector<2x8x96xf32> to vector<2x8x16xf32>
    %18 = arith.truncf %17 : vector<2x8x16xf32> to vector<2x8x16xbf16>
    %19 = vector.extract_strided_slice %8 {offsets = [0, 0, 32], sizes = [2, 8, 16], strides = [1, 1, 1]} : vector<2x8x96xf32> to vector<2x8x16xf32>
    %20 = arith.truncf %19 : vector<2x8x16xf32> to vector<2x8x16xbf16>
    %21 = vector.extract_strided_slice %8 {offsets = [0, 0, 64], sizes = [2, 8, 16], strides = [1, 1, 1]} : vector<2x8x96xf32> to vector<2x8x16xf32>
    %22 = arith.truncf %21 : vector<2x8x16xf32> to vector<2x8x16xbf16>
    "tpu.trace_start"() <{level = 10 : i32, message = "bqd,bkd->bqk"}> : () -> ()
    %cst_12 = arith.constant dense<0.000000e+00> : vector<2x8x8xf32>
    %23 = tpu.matmul %18, %20, %cst_12 {dimension_numbers = #tpu.dot_dimension_numbers<[2], [2], [1], [1], [0, 0, 0, 1, 1, 1], [0], [0]>} : vector<2x8x16xbf16>, vector<2x8x16xbf16>, vector<2x8x8xf32> -> vector<2x8x8xf32>
    "tpu.trace_stop"() : () -> ()
    %24 = arith.addf %23, %15 : vector<2x8x8xf32>
    %cst_13 = arith.constant dense<0xFF800000> : vector<2x8xf32>
    %25 = vector.multi_reduction <maximumf>, %24, %cst_13 [2] : vector<2x8x8xf32> to vector<2x8xf32>
    %26 = vector.shape_cast %25 : vector<2x8xf32> to vector<2x8x1xf32>
    %27 = vector.broadcast %26 : vector<2x8x1xf32> to vector<2x8x8xf32>
    %28 = arith.subf %24, %27 : vector<2x8x8xf32>
    %29 = math.exp %28 : vector<2x8x8xf32>
    %cst_14 = arith.constant dense<0.000000e+00> : vector<2x8xf32>
    %30 = vector.multi_reduction <add>, %29, %cst_14 [2] : vector<2x8x8xf32> to vector<2x8xf32>
    %31 = vector.shape_cast %30 : vector<2x8xf32> to vector<2x8x1xf32>
    %32 = tpu.reciprocal %31 {approx = true} : vector<2x8x1xf32> -> vector<2x8x1xf32>
    %33 = vector.broadcast %32 : vector<2x8x1xf32> to vector<2x8x8xf32>
    %34 = arith.mulf %29, %33 : vector<2x8x8xf32>
    %35 = arith.truncf %34 : vector<2x8x8xf32> to vector<2x8x8xbf16>
    "tpu.trace_start"() <{level = 10 : i32, message = "bqk,bkd->bqd"}> : () -> ()
    %cst_15 = arith.constant dense<0.000000e+00> : vector<2x8x16xf32>
    %36 = tpu.matmul %35, %22, %cst_15 {dimension_numbers = #tpu.dot_dimension_numbers<[2], [1], [1], [2], [0, 0, 0, 1, 1, 2], [0], [0]>} : vector<2x8x8xbf16>, vector<2x8x16xbf16>, vector<2x8x16xf32> -> vector<2x8x16xf32>
    "tpu.trace_stop"() : () -> ()
    %37 = vector.shape_cast %36 : vector<2x8x16xf32> to vector<16x16xf32>
    %38 = arith.truncf %37 : vector<16x16xf32> to vector<16x16xbf16>
    %c0_16 = arith.constant 0 : index
    %c0_17 = arith.constant 0 : index
    %39 = vector.load %arg5[%c0_16, %c0_17] : memref<32x32xbf16, #tpu.memory_space<vmem>>, vector<16x32xbf16>
    %cst_18 = arith.constant dense<0.000000e+00> : vector<16x32xf32>
    %40 = tpu.matmul %38, %39, %cst_18 {dimension_numbers = #tpu.dot_dimension_numbers<[1], [0], [0], [1], [0, 0, 1, 1], [], []>} : vector<16x16xbf16>, vector<16x32xbf16>, vector<16x32xf32> -> vector<16x32xf32>
    %41 = arith.addf %16, %40 : vector<16x32xf32>
    %42 = vector.extract_strided_slice %8 {offsets = [0, 0, 16], sizes = [2, 8, 16], strides = [1, 1, 1]} : vector<2x8x96xf32> to vector<2x8x16xf32>
    %43 = arith.truncf %42 : vector<2x8x16xf32> to vector<2x8x16xbf16>
    %44 = vector.extract_strided_slice %8 {offsets = [0, 0, 48], sizes = [2, 8, 16], strides = [1, 1, 1]} : vector<2x8x96xf32> to vector<2x8x16xf32>
    %45 = arith.truncf %44 : vector<2x8x16xf32> to vector<2x8x16xbf16>
    %46 = vector.extract_strided_slice %8 {offsets = [0, 0, 80], sizes = [2, 8, 16], strides = [1, 1, 1]} : vector<2x8x96xf32> to vector<2x8x16xf32>
    %47 = arith.truncf %46 : vector<2x8x16xf32> to vector<2x8x16xbf16>
    "tpu.trace_start"() <{level = 10 : i32, message = "bqd,bkd->bqk"}> : () -> ()
    %cst_19 = arith.constant dense<0.000000e+00> : vector<2x8x8xf32>
    %48 = tpu.matmul %43, %45, %cst_19 {dimension_numbers = #tpu.dot_dimension_numbers<[2], [2], [1], [1], [0, 0, 0, 1, 1, 1], [0], [0]>} : vector<2x8x16xbf16>, vector<2x8x16xbf16>, vector<2x8x8xf32> -> vector<2x8x8xf32>
    "tpu.trace_stop"() : () -> ()
    %49 = arith.addf %48, %15 : vector<2x8x8xf32>
    %cst_20 = arith.constant dense<0xFF800000> : vector<2x8xf32>
    %50 = vector.multi_reduction <maximumf>, %49, %cst_20 [2] : vector<2x8x8xf32> to vector<2x8xf32>
    %51 = vector.shape_cast %50 : vector<2x8xf32> to vector<2x8x1xf32>
    %52 = vector.broadcast %51 : vector<2x8x1xf32> to vector<2x8x8xf32>
    %53 = arith.subf %49, %52 : vector<2x8x8xf32>
    %54 = math.exp %53 : vector<2x8x8xf32>
    %cst_21 = arith.constant dense<0.000000e+00> : vector<2x8xf32>
    %55 = vector.multi_reduction <add>, %54, %cst_21 [2] : vector<2x8x8xf32> to vector<2x8xf32>
    %56 = vector.shape_cast %55 : vector<2x8xf32> to vector<2x8x1xf32>
    %57 = tpu.reciprocal %56 {approx = true} : vector<2x8x1xf32> -> vector<2x8x1xf32>
    %58 = vector.broadcast %57 : vector<2x8x1xf32> to vector<2x8x8xf32>
    %59 = arith.mulf %54, %58 : vector<2x8x8xf32>
    %60 = arith.truncf %59 : vector<2x8x8xf32> to vector<2x8x8xbf16>
    "tpu.trace_start"() <{level = 10 : i32, message = "bqk,bkd->bqd"}> : () -> ()
    %cst_22 = arith.constant dense<0.000000e+00> : vector<2x8x16xf32>
    %61 = tpu.matmul %60, %47, %cst_22 {dimension_numbers = #tpu.dot_dimension_numbers<[2], [1], [1], [2], [0, 0, 0, 1, 1, 2], [0], [0]>} : vector<2x8x8xbf16>, vector<2x8x16xbf16>, vector<2x8x16xf32> -> vector<2x8x16xf32>
    "tpu.trace_stop"() : () -> ()
    %62 = vector.shape_cast %61 : vector<2x8x16xf32> to vector<16x16xf32>
    %63 = arith.truncf %62 : vector<16x16xf32> to vector<16x16xbf16>
    %c16 = arith.constant 16 : index
    %c0_23 = arith.constant 0 : index
    %64 = vector.load %arg5[%c16, %c0_23] : memref<32x32xbf16, #tpu.memory_space<vmem>>, vector<16x32xbf16>
    %cst_24 = arith.constant dense<0.000000e+00> : vector<16x32xf32>
    %65 = tpu.matmul %63, %64, %cst_24 {dimension_numbers = #tpu.dot_dimension_numbers<[1], [0], [0], [1], [0, 0, 1, 1], [], []>} : vector<16x16xbf16>, vector<16x32xbf16>, vector<16x32xf32> -> vector<16x32xf32>
    %66 = arith.addf %41, %65 : vector<16x32xf32>
    %c0_25 = arith.constant 0 : index
    %c0_26 = arith.constant 0 : index
    %67 = vector.load %arg6[%c0_25, %c0_26] : memref<1x32xf32, #tpu.memory_space<vmem>>, vector<1x32xf32>
    %68 = vector.broadcast %67 : vector<1x32xf32> to vector<16x32xf32>
    %69 = arith.addf %66, %68 : vector<16x32xf32>
    %70 = vector.shape_cast %69 : vector<16x32xf32> to vector<2x8x32xf32>
    %c0_27 = arith.constant 0 : index
    %c0_28 = arith.constant 0 : index
    %c0_29 = arith.constant 0 : index
    %71 = vector.load %arg7[%c0_27, %c0_28, %c0_29] : memref<2x8x32xf32, #tpu.memory_space<vmem>>, vector<2x8x32xf32>
    tpu.vector_store %arg7[%c0_27, %c0_28, %c0_29], %70 {strides = array<i32>} : memref<2x8x32xf32, #tpu.memory_space<vmem>>, vector<2x8x32xf32>,
    return
  }
  func.func @transform_0(%arg0: i32) -> (i32, i32, i32) {
    %c0_i32 = arith.constant 0 : i32
    %c0_i32_0 = arith.constant 0 : i32
    %c0_i32_1 = arith.constant 0 : i32
    return %arg0, %c0_i32, %c0_i32_0 : i32, i32, i32
  }
  func.func @transform_1(%arg0: i32) -> (i32, i32, i32) {
    %c0_i32 = arith.constant 0 : i32
    %c0_i32_0 = arith.constant 0 : i32
    %c0_i32_1 = arith.constant 0 : i32
    return %arg0, %c0_i32, %c0_i32_0 : i32, i32, i32
  }
  func.func @transform_2(%arg0: i32) -> (i32, i32) {
    %c0_i32 = arith.constant 0 : i32
    %c0_i32_0 = arith.constant 0 : i32
    %c0_i32_1 = arith.constant 0 : i32
    return %c0_i32, %c0_i32_0 : i32, i32
  }
  func.func @transform_3(%arg0: i32) -> (i32, i32) {
    %c0_i32 = arith.constant 0 : i32
    %c0_i32_0 = arith.constant 0 : i32
    %c0_i32_1 = arith.constant 0 : i32
    return %c0_i32, %c0_i32_0 : i32, i32
  }
  func.func @transform_4(%arg0: i32) -> (i32, i32) {
    %c0_i32 = arith.constant 0 : i32
    %c0_i32_0 = arith.constant 0 : i32
    %c0_i32_1 = arith.constant 0 : i32
    return %c0_i32, %c0_i32_0 : i32, i32
  }
  func.func @transform_5(%arg0: i32) -> (i32, i32) {
    %c0_i32 = arith.constant 0 : i32
    %c0_i32_0 = arith.constant 0 : i32
    %c0_i32_1 = arith.constant 0 : i32
    return %c0_i32, %c0_i32_0 : i32, i32
  }
  func.func @transform_6(%arg0: i32) -> (i32, i32, i32) {
    %c0_i32 = arith.constant 0 : i32
    %c0_i32_0 = arith.constant 0 : i32
    %c0_i32_1 = arith.constant 0 : i32
    return %arg0, %c0_i32, %c0_i32_0 : i32, i32, i32
  }
}

</mosaic_0001>

<bundles_post_ra>
// kernel: tpu_custom_call.1
= control target key start
LH: loop header
LB: loop body
LE: loop exit
PB: predicated region body
PF: predicated region fallthrough
CT: control target
= control target key end

     0   :  { %s1950_s0 = inlined_call_operand.hbm [shape: f32[4,8,32], index: 0, kind: input, shape index: {}]   ;;  %s1951_s1 = inlined_call_operand.hbm [shape: f32[4,1,8], index: 1, kind: input, shape index: {}]   ;;  %s1952_s2 = inlined_call_operand.hbm [shape: bf16[32,96], index: 2, kind: input, shape index: {}]   ;;  %s1953_s3 = inlined_call_operand.vmem [shape: f32[1,96], index: 3, kind: input, shape index: {}]   ;;  %s1954_s4 = inlined_call_operand.hbm [shape: bf16[32,32], index: 4, kind: input, shape index: {}]   ;;  %s1955_s5 = inlined_call_operand.vmem [shape: f32[1,32], index: 5, kind: input, shape index: {}]   ;;  %s1956_s6 = inlined_call_operand.hbm [shape: f32[4,8,32], index: 6, kind: output, shape index: {}]  }
   0x1   :  { %1960 = sst [smem:[#allocation17_spill]] %s1950_s0 }
   0x2   :  { %1961 = sst [smem:[#allocation18_spill]] %s1952_s2 }
   0x3   :  { %1962 = sst [smem:[#allocation19_spill]] %s1954_s4 }
   0x4   :  { %11 = vsyncpa [#allocation3], 0 }
   0x5   :  { %13 = vsyncpa [#allocation3 + $0x1], 0 }
   0x6   :  { %14 = vsyncpa [#allocation6], 0 }
   0x7   :  { %16 = vsyncpa [#allocation6 + $0x1], 0 }
   0x8   :  { %17 = vsyncpa [#allocation9], 0 }
   0x9   :  { %18 = vsyncpa [#allocation4], 0 }
   0xa   :  { %20 = vsyncpa [#allocation4 + $0x1], 0  ;;  %s1602_s21 = smov 0   ;;  %s1604_s22 = smov 0  }
   0xb   :  { %s1606_s23 = smov 0   ;;  %s1608_s24 = smov 0  }
   0xc LB: > { %s1623_s25 = sadd.s32 4294967295, %s1545_s24   ;;  %s1121_s26 = sadd.s32 4294967294, %s1545_s24   ;;  %s1545_s24 = sphi %s1608_s24, %s1987_s24   ;;  %s1541_s23 = sphi %s1606_s23, %s1986_s23   ;;  %s1537_s22 = sphi %s1604_s22, %s1985_s22   ;;  %s1533_s21 = sphi %s1602_s21, %s1984_s21  }
   0xd   : > { %p46_p0 = scmp.ne.s32.totalorder %s1537_s22, %s1533_s21  ;;  %p1957_p1 = scmp.eq.s32.totalorder %s1623_s25, 0 }
   0xe   : > { %p186_p3 = scmp.eq.s32.totalorder %s1121_s26, 1  ;;  %p1122_p5 = scmp.ge.s32.totalorder %s1545_s24, 1 }
   0xf   : > { %p1632_p4 = por %p1957_p1, %p46_p0  ;;  %p193_p7 = scmp.lt.s32.totalorder %s1545_s24, 3 }
  0x10   : > { %p1637_p6 = por %p186_p3, %p46_p0  ;;  %s1547_s30 = smov [#allocation7]  }
  0x11   : > { %s1963_s27 = scalar_select %p1632_p4, 1, 0 }
  0x12   : > { %s1964_s28 = scalar_select %p1637_p6, 1, 0 }
  0x13   : > { %p1642_p8 = pnand %p1122_p5, %p193_p7  ;;  %s205_s7 = sshll.u32 %s1547_s30, 4  ;;  %s206_s7 = int_to_ptr.vmem [resolvable:$true] %s205_s7 }
  0x14   : > { %s1548_s9 = smov [#allocation8]   ;;  %s1372_s11 = scalar_lea.vmem %s206_s7, 256 }
  0x15   : > { %p1268_p9 = pneg %p1642_p8  ;;  %s221_s10 = sshll.u32 %s1548_s9, 4  ;;  %s222_s10 = int_to_ptr.vmem [resolvable:$true] %s221_s10 }
  0x16   : > { %p1373_p13 = scmp.ne.s32.totalorder %s206_s7, %s1372_s11  ;;  %p1380_p5 = scmp.lt.s32.totalorder %s206_s7, %s206_s7 }
  0x17   : > { %p1651_p11 = pnand %p1268_p9, %p1957_p1  ;;  %p1381_p7 = scmp.lt.s32.totalorder %s1372_s11, %s1372_s11 }
  0x19   : > { %p1363_p12 = pneg %p1651_p11  ;;  %p1382_p10 = por %p1381_p7, %p1380_p5 }
  0x1b   : > { %p1375_p0 = pnand %p1373_p13, %p1363_p12 }
  0x1d   : > { %p1376_p3 = pneg %p1375_p0 }
  0x1f   : > { %p1383_p9 = pnand %p1382_p10, %p1376_p3 }
  0x21   : > { %1386 = shalt.err (!%p1383_p9)
}
  0x22   : > { %s1549_s12 = smov 64   ;;  %s1550_s13 = smov 4  }
  0x23   : > { %s1967_s2 = sld [smem:[#allocation18_spill]]  ;;  %s1398_s16 = scalar_lea.vmem %s222_s10, 256 }
  0x24   : > { %p1399_p1 = scmp.ne.s32.totalorder %s222_s10, %s1398_s16  ;;  %p1406_p2 = scmp.lt.s32.totalorder %s222_s10, %s222_s10 }
  0x25   : > { %p1407_p6 = scmp.lt.s32.totalorder %s1398_s16, %s1398_s16 }
  0x26   : > { %p1401_p13 = pnand %p1399_p1, %p1363_p12 }
  0x27   : > { %p1408_p5 = por %p1407_p6, %p1406_p2 }
  0x28   : > { %p1402_p0 = pneg %p1401_p13 }
  0x29   : > { %1271 = dma.hbm_to_vmem [thread:$0]  (!%p1651_p11), %s1967_s2, 256, %s206_s7, [#allocation6], %s1549_s12, %s1549_s12, %s1550_s13  }
  0x2a   : > { %p1409_p10 = pnand %p1408_p5, %p1402_p0 }
  0x2c   : > { %1412 = shalt.err (!%p1409_p10)
}
  0x2d   : > { %s1968_s4 = sld [smem:[#allocation19_spill]]  ;;  %s1674_s19 = sadd.s32 1, %s1545_s24  }
  0x2e   : > { %s33_s20 = sadd.s32 1, %s1541_s23  ;;  %s30_s26 = ssub.s32 %s1545_s24, %s1674_s19 }
  0x2f   : > { %p40_p1 = scmp.ne.s32.totalorder %s1541_s23, %s1537_s22  ;;  %p31_p2 = scmp.eq.s32.totalorder %s30_s26, 0 }
  0x30   : > { %p41_p6 = scmp.eq.s32.totalorder %s1545_s24, 0  ;;  %p1969_p12 = scmp.eq.s32.totalorder %s1623_s25, 1 }
  0x31   : > { %p1288_p7 = scmp.lt.s32.totalorder %s1545_s24, 2  ;;  %s1693_s8 = sand.u32 1, %s1541_s23  }
  0x32   : > { %p1684_p3 = por %p1969_p12, %p40_p1  ;;  %p42_p9 = por %p41_p6, %p40_p1 }
  0x33   : > { %1274 = dma.hbm_to_vmem [thread:$0]  (!%p1651_p11), %s1968_s4, 256, %s222_s10, [#allocation9], %s1549_s12, %s1549_s12, %s1550_s13  }
  0x34   : > { %s1970_s30 = scalar_select %p1684_p3, 1, 0 }
  0x35   : > { %s1690_s7 = scalar_select %p31_p2, %s1541_s23, %s33_s20  }
  0x36   : > { %s1126_s9 = sshll.u32 %s1693_s8, 4  ;;  %s1160_s10 = sshll.u32 %s1545_s24, 8 }
  0x37   : > { %1971 = sst [smem:[#allocation16_spill]] %s1690_s7  ;;  %s242_s14 = scalar_lea.vmem [#allocation2], %s1126_s9 }
  0x38   : > { %s1972_s0 = sld [smem:[#allocation17_spill]]  ;;  %s249_s15 = sshll.u32 %s242_s14, 4  ;;  %s1702_s15 = int_to_ptr.vmem [resolvable:$true] %s249_s15 }
  0x39   : > { %p1704_p11 = pnand %p1288_p7, %p42_p9  ;;  %s239_s18 = scalar_lea.sflag [#allocation3], %s1693_s8 }
  0x3b   : > { %p1415_p0 = pneg %p1704_p11 }
  0x3e   : > { %s1700_s13 = scalar_lea.hbm %s1972_s0, %s1160_s10  ;;  %s1418_s10 = scalar_lea.hbm %s1972_s0, 512 }
  0x3f   : > { %s1413_s20 = scalar_lea.hbm %s1700_s13, 256  ;;  %p1419_p1 = scmp.lt.s32.totalorder %s1700_s13, %s1972_s0 }
  0x40   : > { %p1414_p13 = scmp.ne.s32.totalorder %s1700_s13, %s1413_s20  ;;  %p1420_p2 = scmp.lt.s32.totalorder %s1418_s10, %s1413_s20 }
  0x42   : > { %p1416_p5 = pnand %p1415_p0, %p1414_p13  ;;  %p1421_p6 = por %p1420_p2, %p1419_p1 }
  0x44   : > { %p1417_p10 = pneg %p1416_p5 }
  0x46   : > { %p1422_p12 = pnand %p1421_p6, %p1417_p10 }
  0x48   : > { %1425 = shalt.err (!%p1422_p12)
}
  0x49   : > { %s1426_s14 = scalar_lea.vmem %s1702_s15, 256  ;;  %s1551_s26 = smov [#allocation2]  }
  0x4a   : > { %p1427_p7 = scmp.ne.s32.totalorder %s1702_s15, %s1426_s14  ;;  %s1431_s9 = sshll.u32 %s1551_s26, 4  ;;  %s1432_s9 = int_to_ptr.vmem [resolvable:$false] %s1431_s9 }
  0x4b   : > { %s1433_s17 = scalar_lea.vmem %s1432_s9, 512  ;;  %p1434_p5 = scmp.lt.s32.totalorder %s1702_s15, %s1432_s9 }
  0x4c   : > { %p1429_p9 = pnand %p1427_p7, %p1415_p0  ;;  %p1435_p3 = scmp.lt.s32.totalorder %s1433_s17, %s1426_s14 }
  0x4e   : > { %p1430_p13 = pneg %p1429_p9  ;;  %p1436_p4 = por %p1435_p3, %p1434_p5 }
  0x50   : > { %p1437_p1 = pnand %p1436_p4, %p1430_p13 }
  0x52   : > { %1440 = shalt.err (!%p1437_p1)
}
  0x53   : > { %s1552_s20 = smov 128   ;;  %s1553_s10 = smov 8  }
  0x54   : > { %1278 = dma.hbm_to_vmem [thread:$0]  (!%p1704_p11), %s1700_s13, 256, %s1702_s15, %s239_s18, %s1552_s20, %s1552_s20, %s1553_s10  }
  0x55   : > { %s1129_s11 = sshll.u32 %s1693_s8, 1  ;;  %s1161_s12 = sshll.u32 %s1545_s24, 5 }
  0x56   : > { %s1741_s14 = scalar_lea.hbm %s1951_s1, %s1161_s12  ;;  %s263_s9 = scalar_lea.vmem [#allocation5], %s1129_s11 }
  0x57   : > { %s270_s0 = sshll.u32 %s263_s9, 4  ;;  %s1974_s2 = sand.u32 1, %s1545_s24   ;;  %s1743_s0 = int_to_ptr.vmem [resolvable:$true] %s270_s0 }
  0x58   : > { %s1747_s4 = scalar_lea.sflag [#allocation6], %s1974_s2  ;;  %s1441_s7 = scalar_lea.hbm %s1741_s14, 32 }
  0x59   : > { %p1442_p4 = scmp.ne.s32.totalorder %s1741_s14, %s1441_s7  ;;  %s1446_s15 = scalar_lea.hbm %s1951_s1, 64 }
  0x5a   : > { %p1447_p2 = scmp.lt.s32.totalorder %s1741_s14, %s1951_s1  ;;  %p1448_p6 = scmp.lt.s32.totalorder %s1446_s15, %s1441_s7 }
  0x5b   : > { %p1444_p3 = pnand %p1442_p4, %p1415_p0 }
  0x5c   : > { %p1449_p12 = por %p1448_p6, %p1447_p2 }
  0x5d   : > { %p1445_p10 = pneg %p1444_p3 }
  0x5f   : > { %p1450_p7 = pnand %p1449_p12, %p1445_p10 }
  0x61   : > { %1453 = shalt.err (!%p1450_p7)
}
  0x62   : > { %s1454_s2 = scalar_lea.vmem %s1743_s0, 32  ;;  %s1554_s10 = smov [#allocation5]  }
  0x63   : > { %p1455_p9 = scmp.ne.s32.totalorder %s1743_s0, %s1454_s2  ;;  %s1459_s11 = sshll.u32 %s1554_s10, 4  ;;  %s1460_s11 = int_to_ptr.vmem [resolvable:$false] %s1459_s11 }
  0x64   : > { %s1461_s12 = scalar_lea.vmem %s1460_s11, 64  ;;  %p1462_p1 = scmp.lt.s32.totalorder %s1743_s0, %s1460_s11 }
  0x65   : > { %p1457_p13 = pnand %p1455_p9, %p1415_p0  ;;  %p1463_p4 = scmp.lt.s32.totalorder %s1461_s12, %s1454_s2 }
  0x67   : > { %p1458_p5 = pneg %p1457_p13  ;;  %p1464_p3 = por %p1463_p4, %p1462_p1 }
  0x69   : > { %p1465_p2 = pnand %p1464_p3, %p1458_p5 }
  0x6b   : > { %1468 = shalt.err (!%p1465_p2)
}
  0x6c   : > { %s1555_s7 = smov 16   ;;  %s1556_s26 = smov 1  }
  0x6d   : > { %1281 = dma.hbm_to_vmem [thread:$0]  (!%p1704_p11), %s1741_s14, 32, %s1743_s0, %s1747_s4, %s1555_s7, %s1555_s7, %s1556_s26  }
  0x6e   : > { %282 = sbr.rel (%p1642_p8) target bundleno = 1895 (0x767), region = 44  ;;  %s1775_s17 = sand.u32 (!%p1642_p8), 1, %s1537_s22  }
  0x6f   : > { %s1133_s9 = sshll.u32 (!%p1642_p8), %s1775_s17, 4  ;;  %s285_s8 = scalar_lea.sflag (!%p1642_p8), [#allocation3], %s1775_s17 }
  0x70   : > { %s288_s13 = scalar_lea.vmem (!%p1642_p8), [#allocation2], %s1133_s9  ;;  %p1975_p0 = scmp.ne.s32.totalorder (!%p1642_p8), %s1963_s27, 0 }
  0x73   : > { %1512 = dma.done.wait (%p1975_p0), %s285_s8, 256  }
  0x74   : > { %1514 = vsyncadd (%p1975_p0), %s285_s8, 4294967040  ;;  %s293_s0 = sand.u32 1, %s1623_s25   ;;  %s1134_s4 = sshll.u32 %s1775_s17, 1 }
  0x75   : > { %s294_s29 = scalar_lea.sflag [#allocation6], %s293_s0  ;;  %s1787_s16 = scalar_lea.vmem [#allocation5], %s1134_s4 }
  0x76   : > { %1516 = dma.done.wait (%p1975_p0), %s294_s29, 32  }
  0x77   : > { %1518 = vsyncadd (%p1975_p0), %s294_s29, 4294967264  ;;  %p1976_p8 = scmp.eq.s32.totalorder %s1623_s25, 0 }
  0x79   : > { %1520 = dma.done.wait (%p1976_p8), [#allocation6], 256   ;;  %p1977_p11 = pmov %p1976_p8 }
  0x7a   : > { %p1978_p10 = pmov %p1976_p8 }
  0x7b   : > { %1522 = vsyncadd (%p1977_p11), [#allocation6], 4294967040 }
  0x7c   : > { %1524 = dma.done.wait (%p1978_p10), [#allocation9], 256   ;;  %p1979_p6 = pmov %p1976_p8 }
  0x7d   : > { %v1557_v0 = vmov 0.0   ;;  %vm1558_vm0 = vmmov 0   ;;  %v1341_v1 = vld [vmem:[#allocation7 + $0x8] sm:$0xff]   ;;  %v1342_v2 = vld [vmem:[#allocation7] sm:$0xff]   ;;  %vm369_vm1 = vcmask 261120   ;;  %s1559_s15 = smov 96   ;;  %v422_v19 = vlaneseq }
  0x7e   : > { %1526 = vsyncadd (%p1979_p6), [#allocation9], 4294967040  ;;  %1186 = vmatprep.subr.bf16.mxu0 %v1557_v0  ;;  %1190 = vmatprep.mubr.msk.bf16.mxu0 %vm1558_vm0, %v1557_v0  ;;  %v343_v3 = vld [vmem:[%s288_s13] sm:$0xff]  ;;  %v344_v4 = vld [vmem:[%s288_s13 + $0x8] sm:$0xff]  ;;  %vm437_vm2 = vcmask 130048   ;;  %vm533_vm3 = vcmask 64512  }
  0x7f   : > { %1194 = vmatprep.subr.bf16.mxu1 %v1557_v0  ;;  %1196 = vmatprep.mubr.msk.bf16.mxu1 %vm1558_vm0, %v1557_v0  ;;  %v345_v5 = vpack.c.bf16 %v344_v4, %v343_v3  ;;  %v1138_v6 = vld [vmem:[%s1953_s3] ss:$0 sm:$0xff]  ;;  %v423_v22 = vshrl.u32 %v422_v19, 7  ;;  %v415_v23 = vld [vmem:[%s1787_s16 + $0x1] sm:$0x1]  ;;  %s1560_s18 = smov 64  }
  0x80   : > { %1187 = vmatpush3.bf16.msra.mxu0 %v1341_v1  ;;  %v414_v20 = vld [vmem:[%s1787_s16] sm:$0x1]  ;;  %v417_v26 = vsub.f32 1.0, %v415_v23  ;;  %s1561_s20 = smov 80   ;;  %vm563_vm4 = vcmask 1043456   ;;  %s1562_s2 = smov 112  }
  0x81   : > { %1188 = vmatprep.subr.bf16.mxu0 %v1557_v0  ;;  %v416_v21 = vsub.f32 1.0, %v414_v20  ;;  %v424_v25 = vsub.s32 0, %v423_v22  ;;  %s1563_s10 = smov 48   ;;  %s1162_s7 = sshll.u32 %s1623_s25, 8 }
  0x82   : > { %v419_v28 = vmul.f32 -1000000.0, %v417_v26  ;;  %s338_s26 = scalar_lea.vmem [#allocation10], %s1133_s9  ;;  %s1904_s4 = scalar_lea.hbm %s1956_s6, %s1162_s7 }
  0x83   : > { %v418_v24 = vmul.f32 -1000000.0, %v416_v21  ;;  %s1006_s8 = sshll.u32 %s338_s26, 4  ;;  %s993_s25 = scalar_lea.sflag [#allocation4], %s1775_s17  ;;  %s1906_s8 = int_to_ptr.vmem [resolvable:$true] %s1006_s8 }
  0x84   : > { %1189 = vmatpush3.bf16.msra.mxu0 %v1342_v2  ;;  %v1838_v31 = vrot.slane %v419_v28, %v424_v25  ;;  %s1469_s9 = scalar_lea.vmem %s1906_s8, 256  ;;  %p1980_p7 = scmp.ne.s32.totalorder %s1970_s30, 0 }
  0x85   : > { %1200 = vmatprep.subr.bf16.mxu0 %v1557_v0  ;;  %v1835_v27 = vrot.slane %v418_v24, %v424_v25  ;;  %p1470_p12 = scmp.ne.s32.totalorder %s1906_s8, %s1469_s9  ;;  %s1564_s29 = smov [#allocation10]  }
  0x86   : > { %s1473_s16 = sshll.u32 %s1564_s29, 4  ;;  %s1474_s16 = int_to_ptr.vmem [resolvable:$false] %s1473_s16 }
  0x87   : > { %1191 = vmatmul.mubr.msk.bf16.vlgmr.msra.gmra.mxu0 %vm369_vm1, %v345_v5  ;;  %p1471_p9 = pnand %p1470_p12, %p1980_p7  ;;  %s1475_s27 = scalar_lea.vmem %s1474_s16, 512 }
  0x88   : > { %1202 = vmatprep.mubr.msk.bf16.mxu0 %vm1558_vm0, %v1557_v0  ;;  %p1476_p5 = scmp.lt.s32.totalorder %s1906_s8, %s1474_s16  ;;  %p1477_p1 = scmp.lt.s32.totalorder %s1475_s27, %s1469_s9 }
  0x89   : > { %p1472_p13 = pneg %p1471_p9 }
  0x8a   : > { %p1478_p4 = por %p1477_p1, %p1476_p5 }
  0x8c   : > { %p1479_p3 = pnand %p1478_p4, %p1472_p13 }
 0x147   : > { %v407_v7 = vpop.f32.mrf.mxu0 }
 0x148   : > { %v408_v8 = vadd.f32 %v1138_v6, %v407_v7 }
 0x149   : > { %v1192_v9 = vpop.f32.mrf.mxu0 }
 0x14a   : > { %v1815_v10 = vpack.c.bf16 %v408_v8, %v408_v8 }
 0x14b   : > { %v410_v11 = vpop.f32.mrf.mxu0 }
 0x14c   : > { %v411_v12 = vadd.f32 %v1138_v6, %v410_v11  ;;  %435 = vrot.lane.b32.xlu0 %v1815_v10, %s1559_s15 }
 0x14d   : > { %v1193_v13 = vpop.f32.mrf.mxu0 }
 0x14e   : > { %v1818_v14 = vpack.c.bf16 %v411_v12, %v411_v12 }
 0x150   : > { %485 = vrot.lane.b32.xlu0 %v1818_v14, %s1559_s15 }
 0x1be   : > { %v436_v15 = vpop.permute.xlu0 %435 }
 0x1bf   : > { %v442_v16 = vsel %vm437_vm2, %v436_v15, 0 }
 0x1c0   : > { %1195 = vmatpush3.bf16.xpose.msra.mxu1 %v442_v16 }
 0x1c1   : > { %1206 = vmatprep.subr.bf16.mxu1 %v1557_v0 }
 0x1c2   : > { %v486_v17 = vpop.permute.xlu0 %485 }
 0x1c3   : > { %v491_v18 = vsel %vm437_vm2, %v486_v17, 0 }
 0x1c4   : > { %1201 = vmatpush3.bf16.xpose.msra.mxu0 %v491_v18 }
 0x1c5   : > { %1212 = vmatprep.subr.bf16.mxu0 %v1557_v0 }
 0x1c7   : > { %1197 = vmatmul.mubr.msk.bf16.vlgmr.msra.gmra.mxu1 %vm437_vm2, %v1815_v10 }
 0x1c8   : > { %1208 = vmatprep.mubr.msk.bf16.mxu1 %vm1558_vm0, %v1557_v0 }
 0x1cb   : > { %1203 = vmatmul.mubr.msk.bf16.vlgmr.msra.gmra.mxu0 %vm437_vm2, %v1818_v14 }
 0x1cc   : > { %1214 = vmatprep.mubr.msk.bf16.mxu0 %vm1558_vm0, %v1557_v0 }
 0x287   : > { %v478_v29 = vpop.f32.mrf.mxu1 }
 0x288   : > { %v479_v30 = vadd.f32 %v478_v29, %v1835_v27 }
 0x289   : > { %v1198_v32 = vpop.f32.mrf.mxu1 }
 0x28a   : > { %v534_v33 = vsel %vm533_vm3, %v479_v30, -inf }
 0x28b   : > { %535 = vmax.xlane.f32.xlu1 %v534_v33  ;;  %v481_v34 = vpop.f32.mrf.mxu1  ;;  %v527_v35 = vpop.f32.mrf.mxu0 }
 0x28c   : > { %v528_v36 = vadd.f32 %v527_v35, %v1838_v31 }
 0x28d   : > { %v1199_v37 = vpop.f32.mrf.mxu1  ;;  %v1204_v38 = vpop.f32.mrf.mxu0 }
 0x28e   : > { %v537_v39 = vsel %vm533_vm3, %v528_v36, -inf }
 0x28f   : > { %538 = vmax.xlane.f32.xlu1 %v537_v39  ;;  %v530_v40 = vpop.f32.mrf.mxu0 }
 0x291   : > { %v1205_v41 = vpop.f32.mrf.mxu0 }
 0x2a0   : > { %558 = vrot.lane.b32.xlu1 %v1815_v10, %s1560_s18 }
 0x2a4   : > { %607 = vrot.lane.b32.xlu1 %v1818_v14, %s1560_s18 }
 0x2a8   : > { %660 = vrot.lane.b32.xlu1 %v1815_v10, %s1561_s20 }
 0x314   : > { %v536_v42 = vpop.xlane.xlu1 %535 }
 0x315   : > { %v540_v43 = vsub.f32 %v479_v30, %v536_v42 }
 0x317   : > { %v542_v44 = vmul.f32 1.442695, %v540_v43 }
 0x318   : > { %v539_v45 = vpop.xlane.xlu1 %538 }
 0x319   : > { %1345 = vpow2.f32 %v542_v44  ;;  %v541_v46 = vsub.f32 %v528_v36, %v539_v45 }
 0x31b   : > { %v544_v47 = vmul.f32 1.442695, %v541_v46 }
 0x31c   : > { %v559_v48 = vpop.permute.xlu1 %558 }
 0x31d   : > { %1347 = vpow2.f32 %v544_v47  ;;  %v565_v49 = vsel %vm563_vm4, %v559_v48, 0 }
 0x31e   : > { %1207 = vmatpush3.bf16.msra.mxu1 %v565_v49 }
 0x31f   : > { %1218 = vmatprep.subr.bf16.mxu1 %v1557_v0 }
 0x320   : > { %v608_v50 = vpop.permute.xlu1 %607 }
 0x321   : > { %v613_v51 = vsel %vm563_vm4, %v608_v50, 0  ;;  %v1343_v50 = vld [vmem:[#allocation8] sm:$0xff]  }
 0x322   : > { %1213 = vmatpush3.bf16.msra.mxu0 %v613_v51  ;;  %v1344_v51 = vld [vmem:[#allocation8 + $0x8] sm:$0xff]  }
 0x323   : > { %1224 = vmatprep.subr.bf16.mxu0 %v1557_v0 }
 0x324   : > { %v661_v56 = vpop.permute.xlu1 %660 }
 0x325   : > { %v666_v63 = vsel %vm437_vm2, %v661_v56, 0 }
 0x326   : > { %v1346_v52 = vpop.eup %1345 }
 0x327   : > { %v546_v53 = vsel %vm533_vm3, %v1346_v52, 0.0 }
 0x328   : > { %547 = vadd.xlane.f32.xlu0 %v546_v53 }
 0x32a   : > { %v1348_v54 = vpop.eup %1347 }
 0x32b   : > { %v549_v55 = vsel %vm533_vm3, %v1348_v54, 0.0 }
 0x32c   : > { %550 = vadd.xlane.f32.xlu1 %v549_v55 }
 0x33d   : > { %710 = vrot.lane.b32.xlu1 %v1818_v14, %s1561_s20 }
 0x33e   : > { %658 = vrot.lane.b32.xlu0 %v1815_v10, %s1562_s2 }
 0x341   : > { %708 = vrot.lane.b32.xlu1 %v1818_v14, %s1562_s2 }
 0x3b1   : > { %v548_v57 = vpop.xlane.xlu0 %547 }
 0x3b2   : > { %1349 = vrcp.f32 %v548_v57 }
 0x3b5   : > { %v551_v58 = vpop.xlane.xlu1 %550  ;;  %v659_v5 = vpop.permute.xlu0 %658 }
 0x3b6   : > { %1351 = vrcp.f32 %v551_v58 }
 0x3b9   : > { %v711_v2 = vpop.permute.xlu1 %710 }
 0x3ba   : > { %v716_v4 = vsel %vm437_vm2, %v711_v2, 0  ;;  %v1154_v2 = vld [vmem:[%s1955_s5] ss:$0 sm:$0xff] }
 0x3bd   : > { %v709_v6 = vpop.permute.xlu1 %708 }
 0x3bf   : > { %v1350_v59 = vpop.eup %1349 }
 0x3c0   : > { %v554_v60 = vmul.f32 %v1350_v59, %v1346_v52 }
 0x3c2   : > { %v556_v61 = vpack.c.bf16 %v554_v60, %v554_v60 }
 0x3c3   : > { %v1352_v62 = vpop.eup %1351 }
 0x3c4   : > { %1209 = vmatmul.mubr.msk.bf16.vlgmr.msra.gmra.mxu1 %vm533_vm3, %v556_v61  ;;  %v555_v1 = vmul.f32 %v1352_v62, %v1348_v54 }
 0x3c5   : > { %1219 = vmatpush3.bf16.xpose.msra.mxu1 %v666_v63  ;;  %1220 = vmatprep.mubr.msk.bf16.mxu1 %vm1558_vm0, %v1557_v0 }
 0x3c6   : > { %v557_v3 = vpack.c.bf16 %v555_v1, %v555_v1  ;;  %1230 = vmatprep.subr.bf16.mxu1 %v1557_v0 }
 0x3c8   : > { %1215 = vmatmul.mubr.msk.bf16.vlgmr.msra.gmra.mxu0 %vm533_vm3, %v557_v3 }
 0x3c9   : > { %1225 = vmatpush3.bf16.xpose.msra.mxu0 %v716_v4  ;;  %1226 = vmatprep.mubr.msk.bf16.mxu0 %vm1558_vm0, %v1557_v0 }
 0x3ca   : > { %1236 = vmatprep.subr.bf16.mxu0 %v1557_v0 }
 0x3cc   : > { %1221 = vmatmul.mubr.msk.bf16.vlgmr.msra.gmra.mxu1 %vm437_vm2, %v659_v5 }
 0x3cd   : > { %1232 = vmatprep.mubr.msk.bf16.mxu1 %vm1558_vm0, %v1557_v0 }
 0x3d0   : > { %1227 = vmatmul.mubr.msk.bf16.vlgmr.msra.gmra.mxu0 %vm437_vm2, %v709_v6 }
 0x3d1   : > { %1238 = vmatprep.mubr.msk.bf16.mxu0 %vm1558_vm0, %v1557_v0 }
 0x484   : > { %v1871_v7 = vpop.f32.mrf.mxu1 }
 0x486   : > { %v1210_v8 = vpop.f32.mrf.mxu1 }
 0x488   : > { %v604_v9 = vpop.f32.mrf.mxu1  ;;  %v649_v11 = vpop.f32.mrf.mxu0 }
 0x489   : > { %v655_v12 = vpack.c.bf16 %v649_v11, %v1871_v7 }
 0x48a   : > { %v1211_v13 = vpop.f32.mrf.mxu1  ;;  %v1216_v15 = vpop.f32.mrf.mxu0 }
 0x48c   : > { %v652_v16 = vpop.f32.mrf.mxu0  ;;  %v702_v17 = vpop.f32.mrf.mxu1 }
 0x48d   : > { %v703_v18 = vadd.f32 %v702_v17, %v1835_v27 }
 0x48e   : > { %v1217_v19 = vpop.f32.mrf.mxu0  ;;  %v1222_v20 = vpop.f32.mrf.mxu1 }
 0x48f   : > { %v758_v21 = vsel %vm533_vm3, %v703_v18, -inf }
 0x490   : > { %759 = vmax.xlane.f32.xlu1 %v758_v21  ;;  %v705_v22 = vpop.f32.mrf.mxu1  ;;  %v752_v23 = vpop.f32.mrf.mxu0 }
 0x491   : > { %v753_v24 = vadd.f32 %v752_v23, %v1838_v31 }
 0x492   : > { %v1223_v25 = vpop.f32.mrf.mxu1  ;;  %v1228_v26 = vpop.f32.mrf.mxu0 }
 0x493   : > { %v761_v28 = vsel %vm533_vm3, %v753_v24, -inf }
 0x494   : > { %762 = vmax.xlane.f32.xlu0 %v761_v28  ;;  %v755_v29 = vpop.f32.mrf.mxu0 }
 0x496   : > { %v1229_v30 = vpop.f32.mrf.mxu0 }
 0x4aa   : > { %830 = vrot.lane.b32.xlu0 %v1818_v14, %s1563_s10 }
 0x519   : > { %v760_v27 = vpop.xlane.xlu1 %759 }
 0x51a   : > { %v764_v32 = vsub.f32 %v703_v18, %v760_v27 }
 0x51c   : > { %v766_v33 = vmul.f32 1.442695, %v764_v32 }
 0x51d   : > { %v763_v34 = vpop.xlane.xlu0 %762 }
 0x51e   : > { %1353 = vpow2.f32 %v766_v33  ;;  %v765_v35 = vsub.f32 %v753_v24, %v763_v34 }
 0x520   : > { %v768_v36 = vmul.f32 1.442695, %v765_v35 }
 0x521   : > { %v831_v37 = vpop.permute.xlu0 %830 }
 0x522   : > { %1355 = vpow2.f32 %v768_v36  ;;  %v836_v31 = vsel %vm563_vm4, %v831_v37, 0 }
 0x523   : > { %1237 = vmatpush3.bf16.msra.mxu0 %v836_v31 }
 0x524   : > { %1248 = vmatprep.subr.bf16.mxu0 %v1557_v0 }
 0x52b   : > { %v1354_v38 = vpop.eup %1353 }
 0x52c   : > { %v770_v39 = vsel %vm533_vm3, %v1354_v38, 0.0 }
 0x52d   : > { %771 = vadd.xlane.f32.xlu1 %v770_v39 }
 0x52f   : > { %v1356_v40 = vpop.eup %1355 }
 0x530   : > { %v773_v14 = vsel %vm533_vm3, %v1356_v40, 0.0 }
 0x531   : > { %774 = vadd.xlane.f32.xlu1 %v773_v14 }
 0x542   : > { %782 = vrot.lane.b32.xlu1 %v1815_v10, %s1563_s10 }
 0x5b6   : > { %v772_v41 = vpop.xlane.xlu1 %771 }
 0x5b7   : > { %1357 = vrcp.f32 %v772_v41 }
 0x5ba   : > { %v775_v42 = vpop.xlane.xlu1 %774 }
 0x5bb   : > { %1359 = vrcp.f32 %v775_v42 }
 0x5be   : > { %v783_v43 = vpop.permute.xlu1 %782 }
 0x5bf   : > { %v788_v44 = vsel %vm563_vm4, %v783_v43, 0 }
 0x5c0   : > { %1231 = vmatpush3.bf16.msra.mxu1 %v788_v44 }
 0x5c1   : > { %1242 = vmatprep.subr.bf16.mxu1 %v1557_v0 }
 0x5c4   : > { %v1358_v45 = vpop.eup %1357 }
 0x5c5   : > { %v778_v46 = vmul.f32 %v1358_v45, %v1354_v38 }
 0x5c7   : > { %v780_v47 = vpack.c.bf16 %v778_v46, %v778_v46 }
 0x5c8   : > { %v1360_v48 = vpop.eup %1359 }
 0x5c9   : > { %1233 = vmatmul.mubr.msk.bf16.vlgmr.msra.gmra.mxu1 %vm533_vm3, %v780_v47  ;;  %v779_v49 = vmul.f32 %v1360_v48, %v1356_v40 }
 0x5ca   : > { %1244 = vmatprep.mubr.msk.bf16.mxu1 %vm1558_vm0, %v1557_v0  ;;  %1243 = vmatpush3.bf16.msra.mxu1 %v1344_v51 }
 0x5cb   : > { %v781_v10 = vpack.c.bf16 %v779_v49, %v779_v49 }
 0x5cd   : > { %1239 = vmatmul.mubr.msk.bf16.vlgmr.msra.gmra.mxu0 %vm533_vm3, %v781_v10 }
 0x5ce   : > { %1249 = vmatpush3.bf16.msra.mxu0 %v1343_v50  ;;  %1250 = vmatprep.mubr.msk.bf16.mxu0 %vm1558_vm0, %v1557_v0 }
 0x5d5   : > { %1251 = vmatmul.mubr.msk.bf16.vlgmr.msra.gmra.mxu0 %vm437_vm2, %v655_v12 }
 0x689   : > { %v824_v52 = vpop.f32.mrf.mxu1 }
 0x68b   : > { %v1234_v53 = vpop.f32.mrf.mxu1 }
 0x68d   : > { %v827_v54 = vpop.f32.mrf.mxu1  ;;  %v872_v55 = vpop.f32.mrf.mxu0 }
 0x68e   : > { %v878_v56 = vpack.c.bf16 %v872_v55, %v824_v52 }
 0x68f   : > { %v1235_v57 = vpop.f32.mrf.mxu1  ;;  %v1240_v58 = vpop.f32.mrf.mxu0 }
 0x690   : > { %1245 = vmatmul.mubr.msk.bf16.vlgmr.msra.gmra.mxu1 %vm437_vm2, %v878_v56 }
 0x691   : > { %v875_v59 = vpop.f32.mrf.mxu0 }
 0x693   : > { %v1241_v60 = vpop.f32.mrf.mxu0 }
 0x695   : > { %v974_v61 = vpop.f32.mrf.mxu0 }
 0x697   : > { %v1252_v62 = vpop.f32.mrf.mxu0 }
 0x699   : > { %v977_v0 = vpop.f32.mrf.mxu0 }
 0x69b   : > { %v1253_v63 = vpop.f32.mrf.mxu0 }
 0x750   : > { %v924_v1 = vpop.f32.mrf.mxu1 }
 0x751   : > { %v975_v3 = vadd.f32 %v974_v61, %v924_v1 }
 0x752   : > { %v1246_v4 = vpop.f32.mrf.mxu1 }
 0x753   : > { %v988_v5 = vadd.f32 %v1154_v2, %v975_v3 }
 0x754   : > { %v927_v6 = vpop.f32.mrf.mxu1 }
 0x755   : > { %990 = vst.msk [vmem:[%s338_s26] sm:$0xff] %vm369_vm1, %v988_v5  ;;  %v978_v7 = vadd.f32 %v977_v0, %v927_v6 }
 0x756   : > { %v1247_v8 = vpop.f32.mrf.mxu1 }
 0x757   : > { %v989_v9 = vadd.f32 %v1154_v2, %v978_v7 }
 0x759   : > { %991 = vst.msk [vmem:[%s338_s26 + $0x8] sm:$0xff] %vm369_vm1, %v989_v9 }
 0x75a   : > { %1482 = shalt.err (!%p1479_p3)
}
 0x75b   : > { %s1483_s14 = scalar_lea.hbm %s1904_s4, 256  ;;  %s1487_s20 = scalar_lea.hbm %s1956_s6, 512 }
 0x75c   : > { %p1484_p2 = scmp.ne.s32.totalorder %s1904_s4, %s1483_s14  ;;  %p1488_p11 = scmp.lt.s32.totalorder %s1904_s4, %s1956_s6 }
 0x75d   : > { %p1489_p10 = scmp.lt.s32.totalorder %s1487_s20, %s1483_s14 }
 0x75e   : > { %p1485_p0 = pnand %p1484_p2, %p1980_p7 }
 0x75f   : > { %p1490_p6 = por %p1489_p10, %p1488_p11 }
 0x760   : > { %p1486_p8 = pneg %p1485_p0 }
 0x762   : > { %p1491_p12 = pnand %p1490_p6, %p1486_p8 }
 0x764   : > { %1494 = shalt.err (!%p1491_p12)
}
 0x765   : > { %s1565_s11 = smov 128   ;;  %s1566_s12 = smov 8  }
 0x766   : > { %1266 = dma.vmem_to_hbm [thread:$0]  (%p1980_p7), %s1906_s8, 256, %s1904_s4, %s993_s25, %s1565_s11, %s1565_s11, %s1566_s12  }
 0x767 PF: > { %s1021_s7 = sand.u32 1, %s1533_s21   ;;  %p1981_p9 = scmp.ne.s32.totalorder %s1964_s28, 0 }
 0x768   : > { %p1982_p13 = scmp.ge.s32.totalorder %s1545_s24, 2  ;;  %s1022_s26 = scalar_lea.sflag [#allocation4], %s1021_s7 }
 0x76a   : > { %p1283_p5 = pnand %p1982_p13, %p1981_p9 }
 0x76c   : > { %p1284_p1 = pneg %p1283_p5 }
 0x76e   : > { %1528 = dma.done.wait (%p1284_p1), %s1022_s26, 256  }
 0x76f   : > { %1530 = vsyncadd (%p1284_p1), %s1022_s26, 4294967040  ;;  %s1983_s13 = sld [smem:[#allocation16_spill]]  ;;  %p23_p4 = scmp.ge.s32.totalorder %s1674_s19, 4  }
 0x770   : > { %s1984_s21 = smov %s1537_s22  ;;  %s1985_s22 = smov %s1541_s23 }
 0x771   : > { %s1987_s24 = smov %s1674_s19  ;;  %25 = sbr.rel (!%p23_p4) target bundleno = 12 (0xc), region = 110 }
 0x775   : > { %s1986_s23 = smov %s1983_s13 }
 0x776   :  { %1027 = vsyncpa [#allocation3], 1 }
 0x777   :  { %1029 = vsyncpa [#allocation3 + $0x1], 1 }
 0x778   :  { %1030 = vsyncpa [#allocation6], 1 }
 0x779   :  { %1032 = vsyncpa [#allocation6 + $0x1], 1 }
 0x77a   :  { %1033 = vsyncpa [#allocation9], 1 }
 0x77b   :  { %1034 = vsyncpa [#allocation4], 1 }
 0x77c   :  { %1036 = vsyncpa [#allocation4 + $0x1], 1 }

</bundles_post_ra>
